<compile_context>
chip_gen: v6e
topology: v6e:2x2x1
jax: 0.10.0
libtpu: 0.0.40
codegen_flags: <defaults>
</compile_context>

<pallas_src>
import functools

import jax
import jax.numpy as jnp
from jax import lax
from jax.experimental import pallas as pl
from jax.experimental.pallas import tpu as pltpu


_VMEM_LIMIT = 32 * 1024 * 1024           # safe headroom on v5e/v6e (128 MiB) and v7x (64 MiB)
_TARGET_TILE_BYTES = 2 * 1024 * 1024     # ~2 MiB per buffer -> good pipeline occupancy


def _row_tile(n_rows: int, n_cols: int, itemsize: int = 4) -> int:
    """Row tile: multiple of 8, ~_TARGET_TILE_BYTES per buffer, capped at n_rows."""
    tr = (_TARGET_TILE_BYTES // max(1, n_cols * itemsize)) // 8 * 8
    tr = max(8, tr)
    if tr >= n_rows:
        return int(n_rows)               # single full-extent block (always legal)
    return int(tr)


def _i32(v: int):
    """uint32 literal -> jnp.int32 scalar with the same bit pattern."""
    return jnp.int32(v - (1 << 32)) if v >= (1 << 31) else jnp.int32(v)


# ------------------------------- LayerNorm ----------------------------------

def _layernorm_kernel(x_ref, g_ref, b_ref, o_ref, *, eps: float, d: int):
    x = x_ref[...].astype(jnp.float32)                        # (TR, D)
    mean = jnp.mean(x, axis=-1, keepdims=True)
    xc = x - mean
    # PyTorch x.std(-1) is the *unbiased* std (ddof = 1); eps is added to std.
    var = jnp.sum(xc * xc, axis=-1, keepdims=True) * (1.0 / (d - 1))
    std = jnp.sqrt(var) + eps
    y = g_ref[...] * (xc / std) + b_ref[...]
    o_ref[...] = y.astype(o_ref.dtype)


def layernorm(x, gamma, beta, *, eps: float = 1e-6):
    orig_shape = x.shape
    d = orig_shape[-1]
    n = x.size // d
    x2 = x.reshape(n, d)
    tr = _row_tile(n, d)
    grid = (pl.cdiv(n, tr),)

    out = pl.pallas_call(
        functools.partial(_layernorm_kernel, eps=float(eps), d=int(d)),
        out_shape=jax.ShapeDtypeStruct((n, d), x.dtype),
        grid_spec=pltpu.PrefetchScalarGridSpec(
            num_scalar_prefetch=0,
            grid=grid,
            in_specs=[
                pl.BlockSpec((tr, d), lambda i: (i, 0)),
                pl.BlockSpec((1, d), lambda i: (0, 0)),
                pl.BlockSpec((1, d), lambda i: (0, 0)),
            ],
            out_specs=pl.BlockSpec((tr, d), lambda i: (i, 0)),
        ),
        compiler_params=pltpu.CompilerParams(
            dimension_semantics=("parallel",),
            vmem_limit_bytes=_VMEM_LIMIT,
        ),
    )(x2, gamma.reshape(1, d), beta.reshape(1, d))
    return out.reshape(orig_shape)


# ------------------------ residual add + dropout -----------------------------

def _residual_dropout_kernel(seed_ref, x_ref, y_ref, o_ref, *, p: float):
    x = x_ref[...].astype(jnp.float32)
    y = y_ref[...].astype(jnp.float32)
    if p > 0.0:
        rows, cols = y_ref.shape
        # Global linear element index for this tile (unique across the grid),
        # so "parallel" grid semantics and any tiling give independent masks.
        base = pl.program_id(0) * (rows * cols)
        rid = lax.broadcasted_iota(jnp.int32, (rows, cols), 0)
        cid = lax.broadcasted_iota(jnp.int32, (rows, cols), 1)
        idx = base + rid * cols + cid
        # murmur3 fmix32 over (index, seed); masked arithmetic shifts == logical
        # shifts, all in int32 (no dtype converts, no stateful PRNG).
        h = idx * _i32(0x9E3779B9) + seed_ref[0]
        h = h ^ ((h >> 16) & _i32(0x0000FFFF))
        h = h * _i32(0x85EBCA6B)
        h = h ^ ((h >> 13) & _i32(0x0007FFFF))
        h = h * _i32(0xC2B2AE35)
        h = h ^ ((h >> 16) & _i32(0x0000FFFF))
        h = h & _i32(0x7FFFFFFF)                    # uniform over [0, 2^31)
        thr = jnp.int32(int(p * float(1 << 31)))    # keep prob = 1 - p (integer-domain test)
        keep = h >= thr
        y = jnp.where(keep, y * (1.0 / (1.0 - p)), 0.0)
    o_ref[...] = (x + y).astype(o_ref.dtype)


def _lane_dense_cols(total: int, fallback: int) -> int:
    for c in (1024, 512, 256, 128):
        if total % c == 0:
            return c
    return fallback


def residual_dropout_add(x, y, *, p: float, seed):
    """x + inverted_dropout(y, p), fused in one lane-dense Pallas kernel."""
    orig_shape = x.shape
    total = x.size
    cols = _lane_dense_cols(total, orig_shape[-1])
    rows = total // cols
    x2 = x.reshape(rows, cols)
    y2 = y.reshape(rows, cols)
    tr = _row_tile(rows, cols)
    grid = (pl.cdiv(rows, tr),)
    seed_arr = jnp.asarray([seed], dtype=jnp.int32)

    out = pl.pallas_call(
        functools.partial(_residual_dropout_kernel, p=float(p)),
        out_shape=jax.ShapeDtypeStruct((rows, cols), x.dtype),
        grid_spec=pltpu.PrefetchScalarGridSpec(
            num_scalar_prefetch=1,                  # seed lands in SMEM
            grid=grid,
            in_specs=[
                pl.BlockSpec((tr, cols), lambda i, s: (i, 0)),
                pl.BlockSpec((tr, cols), lambda i, s: (i, 0)),
            ],
            out_specs=pl.BlockSpec((tr, cols), lambda i, s: (i, 0)),
        ),
        compiler_params=pltpu.CompilerParams(
            dimension_semantics=("parallel",),
            vmem_limit_bytes=_VMEM_LIMIT,
        ),
    )(seed_arr, x2, y2)
    return out.reshape(orig_shape)


# ------------------------------- module --------------------------------------

class SubLayerConnectionPallas:
    """JAX/Pallas port of SubLayerConnection: x + dropout(sublayer(LayerNorm(x)))."""

    def __init__(self, d_model: int, dropout: float = 0.1, eps: float = 1e-6):
        self.d_model = int(d_model)
        self.p = float(dropout)
        self.eps = float(eps)
        self.a_2 = jnp.ones((d_model,), jnp.float32)    # LayerNorm gain
        self.b_2 = jnp.zeros((d_model,), jnp.float32)   # LayerNorm bias

    def __call__(self, x, sublayer, *, seed: int = 0, train: bool = True):
        normed = layernorm(x, self.a_2, self.b_2, eps=self.eps)
        # TODO(synk): `sublayer` is an arbitrary user callable (attention/FFN);
        # it runs as plain JAX between the two Pallas kernels and cannot be
        # fused generically.
        y = sublayer(normed)
        p = self.p if train else 0.0
        return residual_dropout_add(x, y, p=p, seed=seed)


if __name__ == "__main__":
    B, S, D = 2, 8, 32
    key = jax.random.PRNGKey(0)
    kx, kw = jax.random.split(key)
    x = jax.random.normal(kx, (B, S, D), dtype=jnp.float32)
    w = jax.random.normal(kw, (D, D), dtype=jnp.float32) * 0.1
    sublayer = lambda t: jnp.tanh(jnp.dot(t, w, precision=jax.lax.Precision.HIGHEST))

    module = SubLayerConnectionPallas(d_model=D, dropout=0.1)

    # --- eval mode (dropout off): compare against a pure-JAX reference -------
    out_eval = module(x, sublayer, train=False)
    jax.block_until_ready(out_eval)

    def ref_layernorm(t):
        mean = t.mean(-1, keepdims=True)
        std = jnp.sqrt(((t - mean) ** 2).sum(-1, keepdims=True) / (D - 1)) + module.eps
        return module.a_2 * (t - mean) / std + module.b_2

    ref_eval = x + sublayer(ref_layernorm(x))
    assert jnp.allclose(out_eval, ref_eval, atol=1e-5, rtol=1e-5), (
        float(jnp.max(jnp.abs(out_eval - ref_eval))))

    # --- train mode (dropout on, deterministic seed) --------------------------
    out_train = module(x, sublayer, seed=123, train=True)
    jax.block_until_ready(out_train)
    assert out_train.shape == (B, S, D)
    assert bool(jnp.all(jnp.isfinite(out_train)))

    # Each element must be either the plain residual (dropped) or
    # residual + y/(1-p) (kept).
    normed_k = layernorm(x, module.a_2, module.b_2, eps=module.eps)
    y_k = sublayer(normed_k)
    resid = out_train - x
    scaled = y_k / (1.0 - module.p)
    is_dropped = jnp.isclose(resid, 0.0, atol=1e-6)
    is_kept = jnp.isclose(resid, scaled, atol=1e-5, rtol=1e-5)
    assert bool(jnp.all(is_dropped | is_kept))

    print("KERNEL_OK")
</pallas_src>

<mosaic_0001>
module attributes {stable_mosaic.version = 11 : i64} {
  func.func @_layernorm_kernel(%arg0: i32, %arg1: memref<16x32xf32, #tpu.memory_space<vmem>>, %arg2: memref<1x32xf32, #tpu.memory_space<vmem>>, %arg3: memref<1x32xf32, #tpu.memory_space<vmem>>, %arg4: memref<16x32xf32, #tpu.memory_space<vmem>>) attributes {dimension_semantics = [#tpu.dimension_semantics<parallel>], iteration_bounds = array<i64: 1>, scalar_prefetch = 0 : i64, scratch_operands = 0 : i64, tpu.core_type = #tpu.core_type<tc>, window_params = [{transform_indices = @transform_0, window_bounds = array<i64: 16, 32>}, {pipeline_mode = #tpu.pipeline_mode<synchronous>, transform_indices = @transform_1, window_bounds = array<i64: 1, 32>}, {pipeline_mode = #tpu.pipeline_mode<synchronous>, transform_indices = @transform_2, window_bounds = array<i64: 1, 32>}, {transform_indices = @transform_3, window_bounds = array<i64: 16, 32>}]} {
    %c0 = arith.constant 0 : index
    %c0_0 = arith.constant 0 : index
    %0 = vector.load %arg1[%c0, %c0_0] : memref<16x32xf32, #tpu.memory_space<vmem>>, vector<16x32xf32>
    %cst = arith.constant dense<0.000000e+00> : vector<16xf32>
    %1 = vector.multi_reduction <add>, %0, %cst [1] : vector<16x32xf32> to vector<16xf32>
    %2 = vector.shape_cast %1 : vector<16xf32> to vector<16x1xf32>
    %cst_1 = arith.constant 3.200000e+01 : f32
    %3 = vector.broadcast %cst_1 : f32 to vector<16x1xf32>
    %4 = arith.divf %2, %3 : vector<16x1xf32>
    %5 = vector.broadcast %4 : vector<16x1xf32> to vector<16x32xf32>
    %6 = arith.subf %0, %5 : vector<16x32xf32>
    %7 = arith.mulf %6, %6 : vector<16x32xf32>
    %cst_2 = arith.constant dense<0.000000e+00> : vector<16xf32>
    %8 = vector.multi_reduction <add>, %7, %cst_2 [1] : vector<16x32xf32> to vector<16xf32>
    %9 = vector.shape_cast %8 : vector<16xf32> to vector<16x1xf32>
    %cst_3 = arith.constant 0.0322580636 : f32
    %10 = vector.broadcast %cst_3 : f32 to vector<16x1xf32>
    %11 = arith.mulf %9, %10 : vector<16x1xf32>
    %12 = math.sqrt %11 : vector<16x1xf32>
    %cst_4 = arith.constant 9.99999997E-7 : f32
    %13 = vector.broadcast %cst_4 : f32 to vector<16x1xf32>
    %14 = arith.addf %12, %13 : vector<16x1xf32>
    %c0_5 = arith.constant 0 : index
    %c0_6 = arith.constant 0 : index
    %15 = vector.load %arg2[%c0_5, %c0_6] : memref<1x32xf32, #tpu.memory_space<vmem>>, vector<1x32xf32>
    %16 = vector.broadcast %14 : vector<16x1xf32> to vector<16x32xf32>
    %17 = arith.divf %6, %16 : vector<16x32xf32>
    %18 = vector.broadcast %15 : vector<1x32xf32> to vector<16x32xf32>
    %19 = arith.mulf %18, %17 : vector<16x32xf32>
    %c0_7 = arith.constant 0 : index
    %c0_8 = arith.constant 0 : index
    %20 = vector.load %arg3[%c0_7, %c0_8] : memref<1x32xf32, #tpu.memory_space<vmem>>, vector<1x32xf32>
    %21 = vector.broadcast %20 : vector<1x32xf32> to vector<16x32xf32>
    %22 = arith.addf %19, %21 : vector<16x32xf32>
    %c0_9 = arith.constant 0 : index
    %c0_10 = arith.constant 0 : index
    %23 = vector.load %arg4[%c0_9, %c0_10] : memref<16x32xf32, #tpu.memory_space<vmem>>, vector<16x32xf32>
    tpu.vector_store %arg4[%c0_9, %c0_10], %22 {strides = array<i32>} : memref<16x32xf32, #tpu.memory_space<vmem>>, vector<16x32xf32>,
    return
  }
  func.func @transform_0(%arg0: i32) -> (i32, i32) {
    %c0_i32 = arith.constant 0 : i32
    %c0_i32_0 = arith.constant 0 : i32
    return %arg0, %c0_i32 : i32, i32
  }
  func.func @transform_1(%arg0: i32) -> (i32, i32) {
    %c0_i32 = arith.constant 0 : i32
    %c0_i32_0 = arith.constant 0 : i32
    %c0_i32_1 = arith.constant 0 : i32
    return %c0_i32, %c0_i32_0 : i32, i32
  }
  func.func @transform_2(%arg0: i32) -> (i32, i32) {
    %c0_i32 = arith.constant 0 : i32
    %c0_i32_0 = arith.constant 0 : i32
    %c0_i32_1 = arith.constant 0 : i32
    return %c0_i32, %c0_i32_0 : i32, i32
  }
  func.func @transform_3(%arg0: i32) -> (i32, i32) {
    %c0_i32 = arith.constant 0 : i32
    %c0_i32_0 = arith.constant 0 : i32
    return %arg0, %c0_i32 : i32, i32
  }
}

</mosaic_0001>

<bundles_post_ra>
// kernel: tpu_custom_call.1
= control target key start
LH: loop header
LB: loop body
LE: loop exit
PB: predicated region body
PF: predicated region fallthrough
CT: control target
= control target key end

     0   :  { %8 = vsyncpa [#allocation3], 0  ;;  %s216_s0 = inlined_call_operand.hbm [shape: f32[16,32], index: 0, kind: input, shape index: {}]   ;;  %s217_s1 = inlined_call_operand.vmem [shape: f32[1,32], index: 1, kind: input, shape index: {}]   ;;  %s218_s2 = inlined_call_operand.vmem [shape: f32[1,32], index: 2, kind: input, shape index: {}]   ;;  %s219_s3 = inlined_call_operand.hbm [shape: f32[16,32], index: 3, kind: output, shape index: {}]  }
   0x1   :  { %9 = vsyncpa [#allocation4], 0  ;;  %s168_s12 = smov [#allocation2]  }
   0x2   :  { %s15_s13 = sshll.u32 %s168_s12, 4  ;;  %s16_s13 = int_to_ptr.vmem [resolvable:$true] %s15_s13 }
   0x3   :  { %s132_s14 = scalar_lea.vmem %s16_s13, 256  ;;  %p137_p1 = scmp.lt.s32.totalorder %s16_s13, %s16_s13 }
   0x4   :  { %p133_p0 = scmp.ne.s32.totalorder %s16_s13, %s132_s14  ;;  %p138_p2 = scmp.lt.s32.totalorder %s132_s14, %s132_s14 }
   0x6   :  { %p139_p3 = por %p138_p2, %p137_p1 }
   0x8   :  { %p140_p4 = pnand %p139_p3, %p133_p0 }
   0xa   :  { %143 = shalt.err (!%p140_p4)
}
   0xb   :  { %s169_s15 = smov 128   ;;  %s170_s16 = smov 8  }
   0xc   :  { %21 = dma.hbm_to_vmem [thread:$0]  %s216_s0, 256, %s16_s13, [#allocation3], %s169_s15, %s169_s15, %s170_s16  }
   0xd   :  { %164 = dma.done.wait [#allocation3], 256  }
   0xe   :  { %165 = vsyncadd [#allocation3], 4294967040  ;;  %vm31_vm0 = vcmask 261120   ;;  %v29_v0 = vld [vmem:[#allocation2] sm:$0xff]  ;;  %v30_v1 = vld [vmem:[#allocation2 + $0x8] sm:$0xff]  ;;  %s171_s22 = smov [#allocation5]  }
   0xf   :  { %v32_v2 = vsel %vm31_vm0, %v29_v0, 0.0  ;;  %v35_v3 = vsel %vm31_vm0, %v30_v1, 0.0  ;;  %v110_v31 = vld [vmem:[%s217_s1] ss:$0 sm:$0xff]  ;;  %s98_s23 = sshll.u32 %s171_s22, 4  ;;  %s99_s23 = int_to_ptr.vmem [resolvable:$true] %s98_s23 }
  0x10   :  { %33 = vadd.xlane.f32.xlu0 %v32_v2  ;;  %v111_v33 = vld [vmem:[%s218_s2] ss:$0 sm:$0xff]  ;;  %s144_s24 = scalar_lea.vmem %s99_s23, 256  ;;  %p149_p6 = scmp.lt.s32.totalorder %s99_s23, %s99_s23 }
  0x11   :  { %p145_p5 = scmp.ne.s32.totalorder %s99_s23, %s144_s24  ;;  %p150_p7 = scmp.lt.s32.totalorder %s144_s24, %s144_s24 }
  0x13   :  { %p151_p8 = por %p150_p7, %p149_p6 }
  0x14   :  { %36 = vadd.xlane.f32.xlu0 %v35_v3 }
  0x15   :  { %p152_p9 = pnand %p151_p8, %p145_p5 }
  0x99   :  { %v34_v4 = vpop.xlane.xlu0 %33 }
  0x9a   :  { %v39_v5 = vmul.f32 0.03125, %v34_v4 }
  0x9c   :  { %v41_v6 = vsub.f32 %v29_v0, %v39_v5 }
  0x9d   :  { %v37_v7 = vpop.xlane.xlu0 %36 }
  0x9e   :  { %v40_v8 = vmul.f32 0.03125, %v37_v7  ;;  %v43_v9 = vmul.f32 %v41_v6, %v41_v6 }
  0xa0   :  { %v42_v10 = vsub.f32 %v30_v1, %v40_v8  ;;  %v45_v11 = vsel %vm31_vm0, %v43_v9, 0.0 }
  0xa1   :  { %46 = vadd.xlane.f32.xlu1 %v45_v11 }
  0xa2   :  { %v44_v12 = vmul.f32 %v42_v10, %v42_v10 }
  0xa4   :  { %v48_v13 = vsel %vm31_vm0, %v44_v12, 0.0 }
  0xa5   :  { %49 = vadd.xlane.f32.xlu1 %v48_v13 }
 0x12a   :  { %v47_v14 = vpop.xlane.xlu1 %46 }
 0x12b   :  { %v51_v15 = vmul.f32 0.032258064, %v47_v14 }
 0x12d   :  { %116 = vrsqrt.f32 %v51_v15  ;;  %vm55_vm1 = vcmp.eq.f32.partialorder %v51_v15, inf  ;;  %v58_v20 = vand.u32 2147483648, %v51_v15  ;;  %vm57_vm2 = vcmp.eq.f32.partialorder %v51_v15, 0.0 }
 0x12e   :  { %v50_v16 = vpop.xlane.xlu1 %49 }
 0x12f   :  { %v52_v17 = vmul.f32 0.032258064, %v50_v16 }
 0x131   :  { %118 = vrsqrt.f32 %v52_v17  ;;  %vm62_vm3 = vcmp.eq.f32.partialorder %v52_v17, inf  ;;  %v65_v26 = vand.u32 2147483648, %v52_v17  ;;  %vm64_vm4 = vcmp.eq.f32.partialorder %v52_v17, 0.0 }
 0x13a   :  { %v117_v18 = vpop.eup %116 }
 0x13b   :  { %v54_v19 = vmul.f32 %v117_v18, %v51_v15 }
 0x13d   :  { %v56_v21 = vsel %vm55_vm1, %v51_v15, %v54_v19 }
 0x13e   :  { %v119_v22 = vpop.eup %118  ;;  %v59_v23 = vsel %vm57_vm2, %v58_v20, %v56_v21 }
 0x13f   :  { %v67_v24 = vadd.f32 1e-06, %v59_v23  ;;  %v61_v25 = vmul.f32 %v119_v22, %v52_v17 }
 0x141   :  { %120 = vrcp.f32 %v67_v24  ;;  %v63_v27 = vsel %vm62_vm3, %v52_v17, %v61_v25 }
 0x142   :  { %v66_v28 = vsel %vm64_vm4, %v65_v26, %v63_v27 }
 0x143   :  { %v68_v29 = vadd.f32 1e-06, %v66_v28 }
 0x145   :  { %122 = vrcp.f32 %v68_v29 }
 0x14e   :  { %v121_v30 = vpop.eup %120 }
 0x14f   :  { %v71_v32 = vmul.f32 %v121_v30, %v41_v6 }
 0x151   :  { %v80_v34 = vmul.f32 %v110_v31, %v71_v32 }
 0x152   :  { %v123_v35 = vpop.eup %122 }
 0x153   :  { %v73_v36 = vmul.f32 %v123_v35, %v42_v10  ;;  %v89_v37 = vadd.f32 %v111_v33, %v80_v34 }
 0x155   :  { %v81_v38 = vmul.f32 %v110_v31, %v73_v36  ;;  %91 = vst.msk [vmem:[#allocation5] sm:$0xff] %vm31_vm0, %v89_v37 }
 0x157   :  { %v90_v39 = vadd.f32 %v111_v33, %v81_v38 }
 0x159   :  { %92 = vst.msk [vmem:[#allocation5 + $0x8] sm:$0xff] %vm31_vm0, %v90_v39 }
 0x15a   :  { %155 = shalt.err (!%p152_p9)
}
 0x15b   :  { %104 = dma.vmem_to_hbm [thread:$0]  %s99_s23, 256, %s219_s3, [#allocation4], %s169_s15, %s169_s15, %s170_s16  }
 0x15c   :  { %166 = dma.done.wait [#allocation4], 256  }
 0x15d   :  { %167 = vsyncadd [#allocation4], 4294967040 }
 0x15e   :  { %108 = vsyncpa [#allocation3], 1 }
 0x15f   :  { %109 = vsyncpa [#allocation4], 1 }

</bundles_post_ra>
